<compile_context>
chip_gen: v6e
topology: v6e:2x2x1
jax: 0.10.0
libtpu: 0.0.40
codegen_flags: <defaults>
</compile_context>

<pallas_src>
import jax
import jax.numpy as jnp
from jax.experimental import pallas as pl
from jax.experimental.pallas import tpu as pltpu

INPUT_SIZE = 784
HIDDEN_SIZE = 128
NUM_CLASSES = 10
W2_PAD = 128   # second-layer weight N padded 10->128 (once, in prepare_params);
               # the kernel slices back to 10 before the tight store.


def mlp_kernel(x_ref, w1_ref, b1_ref, w2_ref, b2_ref, o_ref):
    # Cast the x tile f32 -> bf16 in-kernel (VALU has huge slack; HBM bytes are
    # the binding resource, so reading f32 x directly beats a pre-pad pass).
    x = x_ref[...].astype(jnp.bfloat16)
    # Layer 1: (tb, 784) @ (784, 128) bf16, f32 accumulation on the MXU.
    h = jnp.dot(x, w1_ref[...], preferred_element_type=jnp.float32)
    h = jnp.maximum(h + b1_ref[...], 0.0)          # bias + ReLU in f32
    # Layer 2: (tb, 128) @ (128, 128) bf16, f32 accumulation.
    o = jnp.dot(h.astype(jnp.bfloat16), w2_ref[...],
                preferred_element_type=jnp.float32)
    # Tight store: only the 10 real classes are written back (40 B/row).
    o_ref[...] = (o[:, :NUM_CLASSES] + b2_ref[...]).astype(o_ref.dtype)


def prepare_params(w1, b1, w2, b2):
    """One-time parameter prep (hoisted out of the per-call path).

    Casts weights to bf16 and zero-pads w2's output dim 10 -> 128 so the
    second matmul is lane-aligned. Zero padding keeps the math exact.
    w1: (784, 128), b1: (128,), w2: (128, 10), b2: (10,)  ('in x out' layout).
    """
    w1_p = w1.astype(jnp.bfloat16)                             # (784, 128)
    b1_p = b1.reshape(1, HIDDEN_SIZE).astype(jnp.float32)      # (1, 128)
    w2_p = jnp.zeros((HIDDEN_SIZE, W2_PAD), jnp.bfloat16)
    w2_p = w2_p.at[:, :NUM_CLASSES].set(w2.astype(jnp.bfloat16))
    b2_p = b2.reshape(1, NUM_CLASSES).astype(jnp.float32)      # (1, 10)
    return w1_p, b1_p, w2_p, b2_p


def _choose_tb(batch):
    # >=4 tiles when possible (>=2 per v7x TensorCore for the megacore split,
    # and pipelined prefetch inside each core), tile capped at 512 rows,
    # multiple of 8 sublanes.
    tb = min(512, max(8, batch // 4))
    return max(8, (tb // 8) * 8)


def neural_net_forward(x, w1_p, b1_p, w2_p, b2_p, *, tb=None):
    """Forward pass. x: (B, 784) float32, params from prepare_params().
    Returns (B, 10) float32 (same math as the PyTorch module)."""
    B = x.shape[0]
    if tb is None:
        tb = _choose_tb(B)
    n_tiles = pl.cdiv(B, tb)
    b_pad = n_tiles * tb
    if b_pad != B:  # only pad batch rows when tb does not divide B
        x = jnp.pad(x, ((0, b_pad - B), (0, 0)))

    flops = 2 * b_pad * (INPUT_SIZE * HIDDEN_SIZE + HIDDEN_SIZE * W2_PAD)
    bytes_accessed = (b_pad * INPUT_SIZE * 4            # x, f32, read once
                      + w1_p.size * 2 + w2_p.size * 2   # bf16 weights
                      + b1_p.size * 4 + b2_p.size * 4
                      + b_pad * NUM_CLASSES * 4)        # tight f32 output

    out = pl.pallas_call(
        mlp_kernel,
        out_shape=jax.ShapeDtypeStruct((b_pad, NUM_CLASSES), jnp.float32),
        grid=(n_tiles,),
        in_specs=[
            # x tiles stream over the batch grid axis (full last dim = legal).
            pl.BlockSpec((tb, INPUT_SIZE), lambda i: (i, 0)),
            # Weights / biases: constant block index -> fetched once and kept
            # VMEM-resident across the whole grid.
            pl.BlockSpec((INPUT_SIZE, HIDDEN_SIZE), lambda i: (0, 0)),
            pl.BlockSpec((1, HIDDEN_SIZE), lambda i: (0, 0)),
            pl.BlockSpec((HIDDEN_SIZE, W2_PAD), lambda i: (0, 0)),
            pl.BlockSpec((1, NUM_CLASSES), lambda i: (0, 0)),
        ],
        out_specs=pl.BlockSpec((tb, NUM_CLASSES), lambda i: (i, 0)),
        compiler_params=pltpu.CompilerParams(
            # Independent batch tiles -> shard across v7x's 2 TensorCores
            # (harmless no-op on single-core v5e/v6e).
            dimension_semantics=("parallel",),
        ),
        cost_estimate=pl.CostEstimate(
            flops=flops, transcendentals=0, bytes_accessed=bytes_accessed),
    )(x, w1_p, b1_p, w2_p, b2_p)

    return out[:B] if b_pad != B else out


def init_params(key):
    # Match PyTorch nn.Linear default init: U(-1/sqrt(fan_in), 1/sqrt(fan_in)).
    k1, k2, k3, k4 = jax.random.split(key, 4)
    bound1 = 1.0 / (INPUT_SIZE ** 0.5)
    bound2 = 1.0 / (HIDDEN_SIZE ** 0.5)
    # Stored transposed relative to PyTorch's (out, in) layout -> (in, out).
    w1 = jax.random.uniform(k1, (INPUT_SIZE, HIDDEN_SIZE), jnp.float32, -bound1, bound1)
    b1 = jax.random.uniform(k2, (HIDDEN_SIZE,), jnp.float32, -bound1, bound1)
    w2 = jax.random.uniform(k3, (HIDDEN_SIZE, NUM_CLASSES), jnp.float32, -bound2, bound2)
    b2 = jax.random.uniform(k4, (NUM_CLASSES,), jnp.float32, -bound2, bound2)
    return w1, b1, w2, b2


if __name__ == "__main__":
    key = jax.random.PRNGKey(0)
    pkey, xkey = jax.random.split(key)
    w1, b1, w2, b2 = init_params(pkey)
    params = prepare_params(w1, b1, w2, b2)   # hoisted one-time param prep

    B = 256  # 4 batch tiles of tb=64 -> exercises the pipelined parallel grid
    x = jax.random.normal(xkey, (B, INPUT_SIZE), jnp.float32)

    fwd = jax.jit(neural_net_forward)
    out = jax.block_until_ready(fwd(x, *params))

    # Reference (same math as the PyTorch forward, pure f32). The kernel uses
    # bf16 operands with f32 accumulation -> compare with bf16-level tolerance.
    ref = jnp.maximum(x @ w1 + b1[None, :], 0.0) @ w2 + b2[None, :]
    assert out.shape == (B, NUM_CLASSES)
    assert jnp.allclose(out, ref, atol=2e-2, rtol=2e-2), (
        float(jnp.max(jnp.abs(out - ref))))

    print("KERNEL_OK")
</pallas_src>

<mosaic_0001>
module attributes {stable_mosaic.version = 11 : i64} {
  func.func @mlp_kernel(%arg0: i32, %arg1: memref<64x784xf32, #tpu.memory_space<vmem>>, %arg2: memref<784x128xbf16, #tpu.memory_space<vmem>>, %arg3: memref<1x128xf32, #tpu.memory_space<vmem>>, %arg4: memref<128x128xbf16, #tpu.memory_space<vmem>>, %arg5: memref<1x10xf32, #tpu.memory_space<vmem>>, %arg6: memref<64x10xf32, #tpu.memory_space<vmem>>) attributes {dimension_semantics = [#tpu.dimension_semantics<parallel>], iteration_bounds = array<i64: 4>, scalar_prefetch = 0 : i64, scratch_operands = 0 : i64, tpu.core_type = #tpu.core_type<tc>, window_params = [{transform_indices = @transform_0, window_bounds = array<i64: 64, 784>}, {pipeline_mode = #tpu.pipeline_mode<synchronous>, transform_indices = @transform_1, window_bounds = array<i64: 784, 128>}, {pipeline_mode = #tpu.pipeline_mode<synchronous>, transform_indices = @transform_2, window_bounds = array<i64: 1, 128>}, {pipeline_mode = #tpu.pipeline_mode<synchronous>, transform_indices = @transform_3, window_bounds = array<i64: 128, 128>}, {pipeline_mode = #tpu.pipeline_mode<synchronous>, transform_indices = @transform_4, window_bounds = array<i64: 1, 10>}, {transform_indices = @transform_5, window_bounds = array<i64: 64, 10>}]} {
    %c0 = arith.constant 0 : index
    %c0_0 = arith.constant 0 : index
    %0 = vector.load %arg1[%c0, %c0_0] : memref<64x784xf32, #tpu.memory_space<vmem>>, vector<64x784xf32>
    %1 = arith.truncf %0 : vector<64x784xf32> to vector<64x784xbf16>
    %c0_1 = arith.constant 0 : index
    %c0_2 = arith.constant 0 : index
    %2 = vector.load %arg2[%c0_1, %c0_2] : memref<784x128xbf16, #tpu.memory_space<vmem>>, vector<784x128xbf16>
    %cst = arith.constant dense<0.000000e+00> : vector<64x128xf32>
    %3 = tpu.matmul %1, %2, %cst {dimension_numbers = #tpu.dot_dimension_numbers<[1], [0], [0], [1], [0, 0, 1, 1], [], []>} : vector<64x784xbf16>, vector<784x128xbf16>, vector<64x128xf32> -> vector<64x128xf32>
    %c0_3 = arith.constant 0 : index
    %c0_4 = arith.constant 0 : index
    %4 = vector.load %arg3[%c0_3, %c0_4] : memref<1x128xf32, #tpu.memory_space<vmem>>, vector<1x128xf32>
    %5 = vector.broadcast %4 : vector<1x128xf32> to vector<64x128xf32>
    %6 = arith.addf %3, %5 : vector<64x128xf32>
    %cst_5 = arith.constant 0.000000e+00 : f32
    %7 = vector.broadcast %cst_5 : f32 to vector<64x128xf32>
    %8 = arith.maximumf %6, %7 : vector<64x128xf32>
    %9 = arith.truncf %8 : vector<64x128xf32> to vector<64x128xbf16>
    %c0_6 = arith.constant 0 : index
    %c0_7 = arith.constant 0 : index
    %10 = vector.load %arg4[%c0_6, %c0_7] : memref<128x128xbf16, #tpu.memory_space<vmem>>, vector<128x128xbf16>
    %cst_8 = arith.constant dense<0.000000e+00> : vector<64x128xf32>
    %11 = tpu.matmul %9, %10, %cst_8 {dimension_numbers = #tpu.dot_dimension_numbers<[1], [0], [0], [1], [0, 0, 1, 1], [], []>} : vector<64x128xbf16>, vector<128x128xbf16>, vector<64x128xf32> -> vector<64x128xf32>
    %12 = vector.extract_strided_slice %11 {offsets = [0, 0], sizes = [64, 10], strides = [1, 1]} : vector<64x128xf32> to vector<64x10xf32>
    %c0_9 = arith.constant 0 : index
    %c0_10 = arith.constant 0 : index
    %13 = vector.load %arg5[%c0_9, %c0_10] : memref<1x10xf32, #tpu.memory_space<vmem>>, vector<1x10xf32>
    %14 = vector.broadcast %13 : vector<1x10xf32> to vector<64x10xf32>
    %15 = arith.addf %12, %14 : vector<64x10xf32>
    %c0_11 = arith.constant 0 : index
    %c0_12 = arith.constant 0 : index
    %16 = vector.load %arg6[%c0_11, %c0_12] : memref<64x10xf32, #tpu.memory_space<vmem>>, vector<64x10xf32>
    tpu.vector_store %arg6[%c0_11, %c0_12], %15 {strides = array<i32>} : memref<64x10xf32, #tpu.memory_space<vmem>>, vector<64x10xf32>,
    return
  }
  func.func @transform_0(%arg0: i32) -> (i32, i32) {
    %c0_i32 = arith.constant 0 : i32
    %c0_i32_0 = arith.constant 0 : i32
    return %arg0, %c0_i32 : i32, i32
  }
  func.func @transform_1(%arg0: i32) -> (i32, i32) {
    %c0_i32 = arith.constant 0 : i32
    %c0_i32_0 = arith.constant 0 : i32
    %c0_i32_1 = arith.constant 0 : i32
    return %c0_i32, %c0_i32_0 : i32, i32
  }
  func.func @transform_2(%arg0: i32) -> (i32, i32) {
    %c0_i32 = arith.constant 0 : i32
    %c0_i32_0 = arith.constant 0 : i32
    %c0_i32_1 = arith.constant 0 : i32
    return %c0_i32, %c0_i32_0 : i32, i32
  }
  func.func @transform_3(%arg0: i32) -> (i32, i32) {
    %c0_i32 = arith.constant 0 : i32
    %c0_i32_0 = arith.constant 0 : i32
    %c0_i32_1 = arith.constant 0 : i32
    return %c0_i32, %c0_i32_0 : i32, i32
  }
  func.func @transform_4(%arg0: i32) -> (i32, i32) {
    %c0_i32 = arith.constant 0 : i32
    %c0_i32_0 = arith.constant 0 : i32
    %c0_i32_1 = arith.constant 0 : i32
    return %c0_i32, %c0_i32_0 : i32, i32
  }
  func.func @transform_5(%arg0: i32) -> (i32, i32) {
    %c0_i32 = arith.constant 0 : i32
    %c0_i32_0 = arith.constant 0 : i32
    return %arg0, %c0_i32 : i32, i32
  }
}

</mosaic_0001>

<bundles_post_ra>
// kernel: neural_net_forward.1
= control target key start
LH: loop header
LB: loop body
LE: loop exit
PB: predicated region body
PF: predicated region fallthrough
CT: control target
= control target key end

     0   :  { %s1574_s18 = smov 0   ;;  %s1878_s0 = inlined_call_operand.vmem [shape: f32[256,784], index: 0, kind: input, shape index: {}]   ;;  %s1879_s1 = inlined_call_operand.vmem [shape: bf16[784,128], index: 1, kind: input, shape index: {}]   ;;  %s1880_s2 = inlined_call_operand.vmem [shape: f32[1,128], index: 2, kind: input, shape index: {}]   ;;  %s1881_s3 = inlined_call_operand.vmem [shape: bf16[128,128], index: 3, kind: input, shape index: {}]   ;;  %s1882_s4 = inlined_call_operand.vmem [shape: f32[1,10], index: 4, kind: input, shape index: {}]   ;;  %s1883_s5 = inlined_call_operand.vmem [shape: f32[256,10], index: 5, kind: output, shape index: {}]  }
   0x1 LB: > { %s1209_s19 = sadd.s32 4294967295, %s1542_s18   ;;  %p1213_p0 = scmp.ge.s32.totalorder %s1542_s18, 1  ;;  %s1542_s18 = sphi %s1574_s18, %s15_s18  }
   0x2   : > { %p189_p1 = scmp.lt.s32.totalorder %s1542_s18, 5 }
   0x4   : > { %p190_p2 = pnand %p1213_p0, %p189_p1 }
   0x5   : > { %s1214_s25 = sshll.u32 (!%p190_p2), %s1209_s19, 3 }
   0x6   : > { %193 = sbr.rel (%p190_p2) target bundleno = 511 (0x1ff), region = 40  ;;  %p219_p3 = scmp.lt.s32.totalorder (!%p190_p2), %s1214_s25, 31 }
   0xb   : > { %v1479_v0 = vld [vmem:[%s1879_s1 + $0x78] sm:$0xff]   ;;  %v1483_v4 = vld [vmem:[%s1879_s1 + $0x70] sm:$0xff]   ;;  %v1487_v8 = vld [vmem:[%s1879_s1 + $0x68] sm:$0xff]   ;;  %s1885_s25 = smov (!%p219_p3, %s1214_s25), 31  ;;  %vm715_vm0 = vcmask 130048   ;;  %vm1144_vm1 = vcmask 80896  }
   0xc   : > { %v1480_v1 = vld [vmem:[%s1879_s1 + $0x38] sm:$0xff]   ;;  %1283 = vmatprep.subr.bf16.mxu0 %v1479_v0  ;;  %v1484_v5 = vld [vmem:[%s1879_s1 + $0x30] sm:$0xff]   ;;  %v1488_v9 = vld [vmem:[%s1879_s1 + $0x28] sm:$0xff]   ;;  %s1470_s24 = smul.u32 56, %s1885_s25  ;;  %s1217_s27 = sshll.u32 %s1885_s25, 3 }
   0xd   : > { %v1481_v2 = vld [vmem:[%s1879_s1 + $0xf8] sm:$0xff]   ;;  %1284 = vmatpush3.bf16.msra.mxu0 %v1480_v1  ;;  %v1485_v6 = vld [vmem:[%s1879_s1 + $0xf0] sm:$0xff]   ;;  %v1489_v10 = vld [vmem:[%s1879_s1 + $0xe8] sm:$0xff]   ;;  %s229_s7 = scalar_lea.vmem %s1883_s5, %s1217_s27 }
   0xe   : > { %v1482_v3 = vld [vmem:[%s1879_s1 + $0xb8] sm:$0xff]   ;;  %1323 = vmatprep.subr.bf16.mxu1 %v1481_v2  ;;  %1285 = vmatprep.subr.bf16.mxu0 %v1483_v4  ;;  %v1486_v7 = vld [vmem:[%s1879_s1 + $0xb0] sm:$0xff]   ;;  %v1490_v11 = vld [vmem:[%s1879_s1 + $0xa8] sm:$0xff]   ;;  %s1677_s10 = scalar_lea.vmem %s1878_s0, %s1470_s24 }
   0xf   : > { %1324 = vmatpush3.bf16.msra.mxu1 %v1482_v3  ;;  %v1491_v12 = vld [vmem:[%s1879_s1 + $0x60] sm:$0xff]   ;;  %v1495_v16 = vld [vmem:[%s1879_s1 + $0x58] sm:$0xff]   ;;  %v1499_v20 = vld [vmem:[%s1879_s1 + $0x50] sm:$0xff]  }
  0x10   : > { %1325 = vmatprep.subr.bf16.mxu1 %v1485_v6  ;;  %v1492_v13 = vld [vmem:[%s1879_s1 + $0x20] sm:$0xff]   ;;  %v1496_v17 = vld [vmem:[%s1879_s1 + $0x18] sm:$0xff]   ;;  %v1500_v21 = vld [vmem:[%s1879_s1 + $0x10] sm:$0xff]  }
  0x11   : > { %1286 = vmatpush3.bf16.msra.mxu0 %v1484_v5  ;;  %v1493_v14 = vld [vmem:[%s1879_s1 + $0xe0] sm:$0xff]   ;;  %v1497_v18 = vld [vmem:[%s1879_s1 + $0xd8] sm:$0xff]   ;;  %v1501_v22 = vld [vmem:[%s1879_s1 + $0xd0] sm:$0xff]  }
  0x12   : > { %1287 = vmatprep.subr.bf16.mxu0 %v1487_v8  ;;  %v1494_v15 = vld [vmem:[%s1879_s1 + $0xa0] sm:$0xff]   ;;  %v1498_v19 = vld [vmem:[%s1879_s1 + $0x98] sm:$0xff]   ;;  %v1502_v23 = vld [vmem:[%s1879_s1 + $0x90] sm:$0xff]  }
  0x13   : > { %1326 = vmatpush3.bf16.msra.mxu1 %v1486_v7  ;;  %v1503_v24 = vld [vmem:[%s1879_s1 + $0x48] sm:$0xff]   ;;  %v1507_v28 = vld [vmem:[%s1879_s1 + $0x40] sm:$0xff]   ;;  %v239_v36 = vld [vmem:[%s1677_s10 + $0x38] sm:$0xff] }
  0x14   : > { %1327 = vmatprep.subr.bf16.mxu1 %v1489_v10  ;;  %v1504_v25 = vld [vmem:[%s1879_s1 + $0x8] sm:$0xff]   ;;  %v1508_v29 = vld [vmem:[%s1879_s1] sm:$0xff]   ;;  %v1511_v38 = vld [vmem:[%s1879_s1 + $0x178] sm:$0xff]  }
  0x15   : > { %1288 = vmatpush3.bf16.msra.mxu0 %v1488_v9  ;;  %v1505_v26 = vld [vmem:[%s1879_s1 + $0xc8] sm:$0xff]   ;;  %v1509_v30 = vld [vmem:[%s1879_s1 + $0xc0] sm:$0xff]   ;;  %v235_v39 = vld [vmem:[%s1677_s10 + $0x18] sm:$0xff] }
  0x16   : > { %1289 = vmatprep.subr.bf16.mxu0 %v1491_v12  ;;  %v1506_v27 = vld [vmem:[%s1879_s1 + $0x88] sm:$0xff]   ;;  %v240_v32 = vld [vmem:[%s1677_s10 + $0x40] sm:$0xff]  ;;  %v242_v40 = vld [vmem:[%s1677_s10 + $0x50] sm:$0xff] }
  0x17   : > { %1328 = vmatpush3.bf16.msra.mxu1 %v1490_v11  ;;  %v233_v31 = vld [vmem:[%s1677_s10 + $0x8] sm:$0xff]  ;;  %v1510_v34 = vld [vmem:[%s1879_s1 + $0x80] sm:$0xff]   ;;  %v291_v41 = vpack.c.bf16 %v242_v40, %v235_v39  ;;  %v1512_v42 = vld [vmem:[%s1879_s1 + $0x138] sm:$0xff]  }
  0x18   : > { %1329 = vmatprep.subr.bf16.mxu1 %v1493_v14  ;;  %v289_v33 = vpack.c.bf16 %v240_v32, %v233_v31  ;;  %v232_v35 = vld [vmem:[%s1677_s10] sm:$0xff]  ;;  %v234_v43 = vld [vmem:[%s1677_s10 + $0x10] sm:$0xff]  ;;  %v241_v44 = vld [vmem:[%s1677_s10 + $0x48] sm:$0xff] }
  0x19   : > { %1290 = vmatpush3.bf16.msra.mxu0 %v1492_v13  ;;  %v288_v37 = vpack.c.bf16 %v239_v36, %v232_v35  ;;  %825 = vmatprep.mubr.bf16.mxu1 %v291_v41  ;;  %v290_v45 = vpack.c.bf16 %v241_v44, %v234_v43  ;;  %v1513_v46 = vld [vmem:[%s1879_s1 + $0x170] sm:$0xff]   ;;  %v247_v48 = vld [vmem:[%s1677_s10 + $0x78] sm:$0xff]  ;;  %v253_v51 = vld [vmem:[%s1677_s10 + $0xa8] sm:$0xff] }
  0x1a   : > { %1291 = vmatprep.subr.bf16.mxu0 %v1495_v16  ;;  %760 = vmatprep.mubr.bf16.mxu0 %v289_v33  ;;  %v1514_v47 = vld [vmem:[%s1879_s1 + $0x130] sm:$0xff]   ;;  %v1515_v54 = vld [vmem:[%s1879_s1 + $0x168] sm:$0xff]   ;;  %v256_v56 = vld [vmem:[%s1677_s10 + $0xc0] sm:$0xff] }
  0x1b   : > { %1330 = vmatpush3.bf16.msra.mxu1 %v1494_v15  ;;  %v254_v49 = vld [vmem:[%s1677_s10 + $0xb0] sm:$0xff]  ;;  %v249_v55 = vld [vmem:[%s1677_s10 + $0x88] sm:$0xff]  ;;  %v248_v59 = vld [vmem:[%s1677_s10 + $0x80] sm:$0xff] }
  0x1c   : > { %1331 = vmatprep.subr.bf16.mxu1 %v1497_v18  ;;  %v246_v50 = vld [vmem:[%s1677_s10 + $0x70] sm:$0xff]  ;;  %v296_v52 = vpack.c.bf16 %v254_v49, %v247_v48  ;;  %v298_v57 = vpack.c.bf16 %v256_v56, %v249_v55  ;;  %v1516_v58 = vld [vmem:[%s1879_s1 + $0x128] sm:$0xff]   ;;  %v255_v60 = vld [vmem:[%s1677_s10 + $0xb8] sm:$0xff] }
  0x1d   : > { %1292 = vmatpush3.bf16.msra.mxu0 %v1496_v17  ;;  %v295_v53 = vpack.c.bf16 %v253_v51, %v246_v50  ;;  %v297_v61 = vpack.c.bf16 %v255_v60, %v248_v59  ;;  %v1517_v62 = vld [vmem:[%s1879_s1 + $0x160] sm:$0xff]   ;;  %v261_v0 = vld [vmem:[%s1677_s10 + $0xe8] sm:$0xff]  ;;  %v267_v4 = vld [vmem:[%s1677_s10 + $0x118] sm:$0xff] }
  0x1e   : > { %1293 = vmatprep.subr.bf16.mxu0 %v1499_v20  ;;  %v1518_v63 = vld [vmem:[%s1879_s1 + $0x120] sm:$0xff]   ;;  %v1519_v5 = vld [vmem:[%s1879_s1 + $0x158] sm:$0xff]   ;;  %v270_v8 = vld [vmem:[%s1677_s10 + $0x130] sm:$0xff] }
  0x1f   : > { %1332 = vmatpush3.bf16.msra.mxu1 %v1498_v19  ;;  %v268_v1 = vld [vmem:[%s1677_s10 + $0x120] sm:$0xff]  ;;  %v263_v6 = vld [vmem:[%s1677_s10 + $0xf8] sm:$0xff]  ;;  %v262_v11 = vld [vmem:[%s1677_s10 + $0xf0] sm:$0xff] }
  0x20   : > { %1333 = vmatprep.subr.bf16.mxu1 %v1501_v22  ;;  %v303_v2 = vpack.c.bf16 %v268_v1, %v261_v0  ;;  %v260_v3 = vld [vmem:[%s1677_s10 + $0xe0] sm:$0xff]  ;;  %v305_v9 = vpack.c.bf16 %v270_v8, %v263_v6  ;;  %v1520_v10 = vld [vmem:[%s1879_s1 + $0x118] sm:$0xff]   ;;  %v269_v12 = vld [vmem:[%s1677_s10 + $0x128] sm:$0xff] }
  0x21   : > { %1294 = vmatpush3.bf16.msra.mxu0 %v1500_v21  ;;  %v302_v7 = vpack.c.bf16 %v267_v4, %v260_v3  ;;  %v1521_v13 = vld [vmem:[%s1879_s1 + $0x180] sm:$0xff]   ;;  %v304_v14 = vpack.c.bf16 %v269_v12, %v262_v11  ;;  %v1522_v15 = vld [vmem:[%s1879_s1 + $0x150] sm:$0xff]   ;;  %v275_v17 = vld [vmem:[%s1677_s10 + $0x158] sm:$0xff] }
  0x22   : > { %1295 = vmatprep.subr.bf16.mxu0 %v1503_v24  ;;  %v1523_v16 = vld [vmem:[%s1879_s1 + $0x110] sm:$0xff]   ;;  %v281_v21 = vld [vmem:[%s1677_s10 + $0x188] sm:$0xff]  ;;  %v284_v24 = vld [vmem:[%s1677_s10 + $0x1a0] sm:$0xff] }
  0x23   : > { %1334 = vmatpush3.bf16.msra.mxu1 %v1502_v23  ;;  %v282_v18 = vld [vmem:[%s1677_s10 + $0x190] sm:$0xff]  ;;  %v1524_v22 = vld [vmem:[%s1879_s1 + $0x148] sm:$0xff]   ;;  %v1527_v33 = vld [vmem:[%s1879_s1 + $0x100] sm:$0xff]  }
  0x24   : > { %1335 = vmatprep.subr.bf16.mxu1 %v1505_v26  ;;  %v274_v19 = vld [vmem:[%s1677_s10 + $0x150] sm:$0xff]  ;;  %v310_v20 = vpack.c.bf16 %v282_v18, %v275_v17  ;;  %v277_v23 = vld [vmem:[%s1677_s10 + $0x168] sm:$0xff]  ;;  %v236_v35 = vld [vmem:[%s1677_s10 + $0x20] sm:$0xff] }
  0x25   : > { %1296 = vmatpush3.bf16.msra.mxu0 %v1504_v25  ;;  %v309_v25 = vpack.c.bf16 %v281_v21, %v274_v19  ;;  %v312_v26 = vpack.c.bf16 %v284_v24, %v277_v23  ;;  %v237_v32 = vld [vmem:[%s1677_s10 + $0x28] sm:$0xff]  ;;  %v251_v41 = vld [vmem:[%s1677_s10 + $0x98] sm:$0xff]  ;;  %v252_v44 = vld [vmem:[%s1677_s10 + $0xa0] sm:$0xff] }
  0x26   : > { %1297 = vmatprep.subr.bf16.mxu0 %v1507_v28  ;;  %v276_v28 = vld [vmem:[%s1677_s10 + $0x160] sm:$0xff]  ;;  %v245_v39 = vld [vmem:[%s1677_s10 + $0x68] sm:$0xff]  ;;  %v250_v50 = vld [vmem:[%s1677_s10 + $0x90] sm:$0xff] }
  0x27   : > { %1336 = vmatpush3.bf16.msra.mxu1 %v1506_v27  ;;  %v1525_v27 = vld [vmem:[%s1879_s1 + $0x108] sm:$0xff]   ;;  %v280_v55 = vld [vmem:[%s1677_s10 + $0x180] sm:$0xff]  ;;  %v287_v56 = vld [vmem:[%s1677_s10 + $0x1b8] sm:$0xff] }
  0x28   : > { %1337 = vmatprep.subr.bf16.mxu1 %v1509_v30  ;;  %v1526_v30 = vld [vmem:[%s1879_s1 + $0x140] sm:$0xff]   ;;  %v273_v48 = vld [vmem:[%s1677_s10 + $0x148] sm:$0xff]  ;;  %v315_v59 = vpack.c.bf16 %v287_v56, %v280_v55  ;;  %v1529_v6 = vld [vmem:[%s1881_s3 + $0x30] sm:$0xff]  }
  0x29   : > { %1298 = vmatpush3.bf16.msra.mxu0 %v1508_v29  ;;  %v283_v29 = vld [vmem:[%s1677_s10 + $0x198] sm:$0xff]  ;;  %v257_v51 = vld [vmem:[%s1677_s10 + $0xc8] sm:$0xff]  ;;  %v264_v60 = vld [vmem:[%s1677_s10 + $0x100] sm:$0xff] }
  0x2a   : > { %1363 = vmatprep.subr.bf16.mxu0 %v1511_v38  ;;  %v311_v31 = vpack.c.bf16 %v283_v29, %v276_v28  ;;  %v238_v38 = vld [vmem:[%s1677_s10 + $0x30] sm:$0xff]  ;;  %v285_v3 = vld [vmem:[%s1677_s10 + $0x1a8] sm:$0xff]  ;;  %v1531_v8 = vld [vmem:[%s1881_s3 + $0x20] sm:$0xff]  }
  0x2b   : > { %1338 = vmatpush3.bf16.msra.mxu1 %v1510_v34  ;;  %v244_v34 = vld [vmem:[%s1677_s10 + $0x60] sm:$0xff]  ;;  %v294_v40 = vpack.c.bf16 %v245_v39, %v238_v38  ;;  %v1534_v11 = vld [vmem:[%s1881_s3 + $0x8] sm:$0xff]  }
  0x2c   : > { %761 = vmatmul.mubr.bf16.vlgmr.msra.gmra.mxu0 %v288_v37  ;;  %1420 = vmatprep.subr.bf16.mxu1 %v1521_v13  ;;  %v293_v36 = vpack.c.bf16 %v244_v34, %v237_v32  ;;  %v243_v37 = vld [vmem:[%s1677_s10 + $0x58] sm:$0xff]  ;;  %v1535_v12 = vld [vmem:[%s1881_s3] sm:$0xff]  }
  0x2d   : > { %1364 = vmatpush3.bf16.msra.mxu0 %v1512_v42  ;;  %768 = vmatprep.mubr.bf16.mxu0 %v296_v52  ;;  %v258_v42 = vld [vmem:[%s1677_s10 + $0xd0] sm:$0xff]  ;;  %v292_v43 = vpack.c.bf16 %v243_v37, %v236_v35  ;;  %v265_v52 = vld [vmem:[%s1677_s10 + $0x108] sm:$0xff] }
  0x2e   : > { %826 = vmatmul.mubr.bf16.vlgmr.msra.gmra.mxu1 %v290_v45  ;;  %1365 = vmatprep.subr.bf16.mxu0 %v1513_v46  ;;  %v259_v45 = vld [vmem:[%s1677_s10 + $0xd8] sm:$0xff]  ;;  %v300_v46 = vpack.c.bf16 %v258_v42, %v251_v41  ;;  %v1832_v41 = vld [vmem:[%s1880_s2] ss:$0 sm:$0xff] }
  0x2f   : > { %833 = vmatprep.mubr.bf16.mxu1 %v298_v57  ;;  %1421 = vmatpush3.bf16.msra.mxu1 %v1521_v13  ;;  %v301_v49 = vpack.c.bf16 %v259_v45, %v252_v44  ;;  %v299_v57 = vpack.c.bf16 %v257_v51, %v250_v50 }
  0x31   : > { %1366 = vmatpush3.bf16.msra.mxu0 %v1514_v47  ;;  %v266_v47 = vld [vmem:[%s1677_s10 + $0x110] sm:$0xff] }
  0x32   : > { %1367 = vmatprep.subr.bf16.mxu0 %v1515_v54  ;;  %v308_v54 = vpack.c.bf16 %v273_v48, %v266_v47 }
  0x34   : > { %769 = vmatmul.mubr.bf16.gmra.mxu0 %v295_v53  ;;  %v272_v53 = vld [vmem:[%s1677_s10 + $0x140] sm:$0xff] }
  0x35   : > { %1368 = vmatpush3.bf16.msra.mxu0 %v1516_v58  ;;  %776 = vmatprep.mubr.bf16.mxu0 %v303_v2  ;;  %v307_v58 = vpack.c.bf16 %v272_v53, %v265_v52  ;;  %v278_v2 = vld [vmem:[%s1677_s10 + $0x170] sm:$0xff] }
  0x36   : > { %1369 = vmatprep.subr.bf16.mxu0 %v1517_v62  ;;  %834 = vmatmul.mubr.bf16.gmra.mxu1 %v297_v61  ;;  %v271_v61 = vld [vmem:[%s1677_s10 + $0x138] sm:$0xff]  ;;  %v313_v4 = vpack.c.bf16 %v285_v3, %v278_v2 }
  0x37   : > { %841 = vmatprep.mubr.bf16.mxu1 %v305_v9  ;;  %v279_v62 = vld [vmem:[%s1677_s10 + $0x178] sm:$0xff]  ;;  %v306_v0 = vpack.c.bf16 %v271_v61, %v264_v60 }
  0x38   : > { %v1532_v9 = vld [vmem:[%s1881_s3 + $0x18] sm:$0xff]  }
  0x39   : > { %1370 = vmatpush3.bf16.msra.mxu0 %v1518_v63  ;;  %v286_v63 = vld [vmem:[%s1677_s10 + $0x1b0] sm:$0xff] }
  0x3a   : > { %1371 = vmatprep.subr.bf16.mxu0 %v1519_v5  ;;  %v314_v1 = vpack.c.bf16 %v286_v63, %v279_v62  ;;  %v1528_v5 = vld [vmem:[%s1881_s3 + $0x38] sm:$0xff]  }
  0x3b   : > { %1454 = vmatprep.subr.bf16.mxu1 %v1528_v5 }
  0x3c   : > { %777 = vmatmul.mubr.bf16.gmra.mxu0 %v302_v7  ;;  %v1530_v7 = vld [vmem:[%s1881_s3 + $0x28] sm:$0xff]  }
  0x3d   : > { %1372 = vmatpush3.bf16.msra.mxu0 %v1520_v10  ;;  %784 = vmatprep.mubr.bf16.mxu0 %v310_v20  ;;  %v1533_v10 = vld [vmem:[%s1881_s3 + $0x10] sm:$0xff]  }
  0x3e   : > { %1373 = vmatprep.subr.bf16.mxu0 %v1522_v15  ;;  %842 = vmatmul.mubr.bf16.gmra.mxu1 %v304_v14 }
  0x3f   : > { %849 = vmatprep.mubr.bf16.mxu1 %v312_v26 }
  0x41   : > { %1374 = vmatpush3.bf16.msra.mxu0 %v1523_v16 }
  0x42   : > { %1375 = vmatprep.subr.bf16.mxu0 %v1524_v22 }
  0x44   : > { %785 = vmatmul.mubr.bf16.gmra.mxu0 %v309_v25 }
  0x45   : > { %1376 = vmatpush3.bf16.msra.mxu0 %v1525_v27  ;;  %890 = vmatprep.mubr.bf16.mxu0 %v293_v36 }
  0x46   : > { %1377 = vmatprep.subr.bf16.mxu0 %v1526_v30  ;;  %850 = vmatmul.mubr.bf16.gmra.mxu1 %v311_v31 }
  0x47   : > { %1422 = vmatprep.mubr.msk.bf16.mxu1 %vm715_vm0, %v294_v40 }
  0x49   : > { %1378 = vmatpush3.bf16.msra.mxu0 %v1527_v33 }
  0x4a   : > { %1430 = vmatprep.subr.bf16.mxu0 %v1528_v5 }
  0x4c   : > { %891 = vmatmul.mubr.bf16.vlgmr.msra.gmra.mxu0 %v292_v43 }
  0x4d   : > { %898 = vmatprep.mubr.bf16.mxu0 %v300_v46  ;;  %1431 = vmatpush3.bf16.msra.mxu0 %v1528_v5 }
  0x4e   : > { %1423 = vmatmul.mubr.msk.bf16.vlgmr.msra.gmra.mxu1 %vm715_vm0, %v301_v49  ;;  %1432 = vmatprep.subr.bf16.mxu0 %v1529_v6 }
  0x4f   : > { %1426 = vmatprep.mubr.msk.bf16.mxu1 %vm715_vm0, %v308_v54  ;;  %1462 = vmatpush3.bf16.msra.mxu1 %v1528_v5 }
  0x50   : > { %1455 = vmatprep.subr.bf16.mxu1 %v1529_v6 }
  0x51   : > { %1433 = vmatpush3.bf16.msra.mxu0 %v1529_v6 }
  0x52   : > { %1434 = vmatprep.subr.bf16.mxu0 %v1530_v7 }
  0x53   : > { %1463 = vmatpush3.bf16.msra.mxu1 %v1529_v6 }
  0x54   : > { %899 = vmatmul.mubr.bf16.gmra.mxu0 %v299_v57  ;;  %1456 = vmatprep.subr.bf16.mxu1 %v1530_v7 }
  0x55   : > { %906 = vmatprep.mubr.bf16.mxu0 %v307_v58  ;;  %1435 = vmatpush3.bf16.msra.mxu0 %v1530_v7 }
  0x56   : > { %1427 = vmatmul.mubr.msk.bf16.gmra.mxu1 %vm715_vm0, %v315_v59  ;;  %1436 = vmatprep.subr.bf16.mxu0 %v1531_v8 }
  0x57   : > { %1464 = vmatpush3.bf16.msra.mxu1 %v1530_v7 }
  0x58   : > { %1457 = vmatprep.subr.bf16.mxu1 %v1531_v8 }
  0x59   : > { %1437 = vmatpush3.bf16.msra.mxu0 %v1531_v8 }
  0x5a   : > { %1438 = vmatprep.subr.bf16.mxu0 %v1532_v9 }
  0x5b   : > { %1465 = vmatpush3.bf16.msra.mxu1 %v1531_v8 }
  0x5c   : > { %907 = vmatmul.mubr.bf16.gmra.mxu0 %v306_v0  ;;  %1458 = vmatprep.subr.bf16.mxu1 %v1532_v9 }
  0x5d   : > { %914 = vmatprep.mubr.bf16.mxu0 %v314_v1  ;;  %1439 = vmatpush3.bf16.msra.mxu0 %v1532_v9 }
  0x5e   : > { %1440 = vmatprep.subr.bf16.mxu0 %v1533_v10 }
  0x5f   : > { %1466 = vmatpush3.bf16.msra.mxu1 %v1532_v9 }
  0x60   : > { %1459 = vmatprep.subr.bf16.mxu1 %v1533_v10 }
  0x61   : > { %1441 = vmatpush3.bf16.msra.mxu0 %v1533_v10 }
  0x62   : > { %1442 = vmatprep.subr.bf16.mxu0 %v1534_v11 }
  0x63   : > { %1467 = vmatpush3.bf16.msra.mxu1 %v1533_v10 }
  0x64   : > { %915 = vmatmul.mubr.bf16.gmra.mxu0 %v313_v4  ;;  %1460 = vmatprep.subr.bf16.mxu1 %v1534_v11 }
  0x65   : > { %1443 = vmatpush3.bf16.msra.mxu0 %v1534_v11 }
  0x66   : > { %1444 = vmatprep.subr.bf16.mxu0 %v1535_v12 }
  0x67   : > { %1468 = vmatpush3.bf16.msra.mxu1 %v1534_v11 }
  0x68   : > { %1461 = vmatprep.subr.bf16.mxu1 %v1535_v12 }
  0x69   : > { %1445 = vmatpush3.bf16.msra.mxu0 %v1535_v12 }
  0x6b   : > { %1469 = vmatpush3.bf16.msra.mxu1 %v1535_v12 }
  0xec   : > { %v1299_v13 = vpop.f32.mrf.mxu0 }
  0xee   : > { %v1300_v14 = vpop.f32.mrf.mxu0  ;;  %v1339_v15 = vpop.f32.mrf.mxu1 }
  0xef   : > { %v1301_v39 = vadd.f32 %v1300_v14, %v1299_v13 }
  0xf0   : > { %v1302_v16 = vpop.f32.mrf.mxu0  ;;  %v1340_v17 = vpop.f32.mrf.mxu1 }
  0xf1   : > { %v763_v45 = vadd.f32 %v1301_v39, %v1832_v41  ;;  %v1341_v46 = vadd.f32 %v1340_v17, %v1339_v15 }
  0xf2   : > { %v1303_v18 = vpop.f32.mrf.mxu0  ;;  %v1342_v19 = vpop.f32.mrf.mxu1 }
  0xf3   : > { %v1304_v47 = vadd.f32 %v1303_v18, %v1302_v16  ;;  %v828_v53 = vadd.f32 %v1341_v46, %v763_v45 }
  0xf4   : > { %v1305_v20 = vpop.f32.mrf.mxu0  ;;  %v1343_v21 = vpop.f32.mrf.mxu1 }
  0xf5   : > { %v766_v54 = vadd.f32 %v1304_v47, %v1832_v41  ;;  %v1344_v55 = vadd.f32 %v1343_v21, %v1342_v19 }
  0xf6   : > { %v1306_v22 = vpop.f32.mrf.mxu0  ;;  %v1345_v23 = vpop.f32.mrf.mxu1 }
  0xf7   : > { %v1307_v51 = vadd.f32 %v1306_v22, %v1305_v20  ;;  %v831_v0 = vadd.f32 %v1344_v55, %v766_v54 }
  0xf8   : > { %v1308_v24 = vpop.f32.mrf.mxu0  ;;  %v1346_v25 = vpop.f32.mrf.mxu1 }
  0xf9   : > { %v771_v61 = vadd.f32 %v1307_v51, %v1832_v41  ;;  %v1347_v62 = vadd.f32 %v1346_v25, %v1345_v23 }
  0xfa   : > { %v1309_v26 = vpop.f32.mrf.mxu0  ;;  %v1348_v27 = vpop.f32.mrf.mxu1 }
  0xfb   : > { %v1310_v1 = vadd.f32 %v1309_v26, %v1308_v24  ;;  %v836_v8 = vadd.f32 %v1347_v62, %v771_v61 }
  0xfc   : > { %v1311_v28 = vpop.f32.mrf.mxu0  ;;  %v1349_v29 = vpop.f32.mrf.mxu1 }
  0xfd   : > { %v774_v11 = vadd.f32 %v1310_v1, %v1832_v41  ;;  %v1350_v12 = vadd.f32 %v1349_v29, %v1348_v27 }
  0xfe   : > { %v1312_v30 = vpop.f32.mrf.mxu0  ;;  %v1351_v31 = vpop.f32.mrf.mxu1 }
  0xff   : > { %v1313_v9 = vadd.f32 %v1312_v30, %v1311_v28  ;;  %v839_v23 = vadd.f32 %v1350_v12, %v774_v11 }
 0x100   : > { %v1314_v32 = vpop.f32.mrf.mxu0  ;;  %v1352_v33 = vpop.f32.mrf.mxu1 }
 0x101   : > { %v779_v20 = vadd.f32 %v1313_v9, %v1832_v41  ;;  %v1353_v21 = vadd.f32 %v1352_v33, %v1351_v31 }
 0x102   : > { %v1315_v34 = vpop.f32.mrf.mxu0  ;;  %v1823_v35 = vpop.f32.mrf.mxu1 }
 0x103   : > { %v1316_v24 = vadd.f32 %v1315_v34, %v1314_v32  ;;  %v844_v27 = vadd.f32 %v1353_v21, %v779_v20 }
 0x104   : > { %v1317_v36 = vpop.f32.mrf.mxu0  ;;  %v1825_v37 = vpop.f32.mrf.mxu1 }
 0x105   : > { %v782_v47 = vadd.f32 %v1316_v24, %v1832_v41 }
 0x106   : > { %v1318_v38 = vpop.f32.mrf.mxu0  ;;  %v1827_v40 = vpop.f32.mrf.mxu1 }
 0x107   : > { %v1319_v29 = vadd.f32 %v1318_v38, %v1317_v36 }
 0x108   : > { %v1834_v42 = vpop.f32.mrf.mxu0  ;;  %v1836_v43 = vpop.f32.mrf.mxu1 }
 0x109   : > { %v787_v54 = vadd.f32 %v1319_v29, %v1832_v41  ;;  %v1359_v55 = vadd.f32 %v1836_v43, %v1827_v40 }
 0x10a   : > { %v1838_v44 = vpop.f32.mrf.mxu0  ;;  %v1841_v48 = vpop.f32.mrf.mxu1 }
 0x10b   : > { %v1322_v38 = vadd.f32 %v1838_v44, %v1834_v42  ;;  %v852_v61 = vadd.f32 %v1359_v55, %v787_v54 }
 0x10c   : > { %v1379_v49 = vpop.f32.mrf.mxu0  ;;  %v1843_v50 = vpop.f32.mrf.mxu1 }
 0x10e   : > { %v1380_v52 = vpop.f32.mrf.mxu0  ;;  %v1424_v57 = vpop.f32.mrf.mxu1 }
 0x10f   : > { %v1381_v56 = vadd.f32 %v1380_v52, %v1379_v49  ;;  %v1356_v49 = vadd.f32 %v1825_v37, %v1823_v35 }
 0x110   : > { %v1382_v58 = vpop.f32.mrf.mxu0  ;;  %v957_v60 = vpop.f32.mrf.mxu1 }
 0x111   : > { %v893_v59 = vadd.f32 %v1381_v56, %v828_v53  ;;  %v847_v36 = vadd.f32 %v1356_v49, %v782_v47 }
 0x112   : > { %v1383_v63 = vpop.f32.mrf.mxu0  ;;  %v1425_v3 = vpop.f32.mrf.mxu1 }
 0x113   : > { %v1384_v2 = vadd.f32 %v1383_v63, %v1382_v58  ;;  %v958_v5 = vadd.f32 %v957_v60, %v893_v59  ;;  %v790_v63 = vadd.f32 %v1322_v38, %v1832_v41 }
 0x114   : > { %v1385_v4 = vpop.f32.mrf.mxu0  ;;  %v960_v7 = vpop.f32.mrf.mxu1 }
 0x115   : > { %v896_v6 = vadd.f32 %v1384_v2, %v831_v0  ;;  %v988_v17 = vmax.f32 %v958_v5, 0.0  ;;  %v1362_v0 = vadd.f32 %v1843_v50, %v1841_v48  ;;  %v1280_v48 = vld [vmem:[%s1882_s4] ss:$0 sm:$0xff] }
 0x116   : > { %v1386_v10 = vpop.f32.mrf.mxu0  ;;  %v1428_v16 = vpop.f32.mrf.mxu1 }
 0x117   : > { %v1387_v13 = vadd.f32 %v1386_v10, %v1385_v4  ;;  %v961_v14 = vadd.f32 %v960_v7, %v896_v6  ;;  %v855_v4 = vadd.f32 %v1362_v0, %v790_v63 }
 0x118   : > { %v1388_v15 = vpop.f32.mrf.mxu0  ;;  %v973_v30 = vpop.f32.mrf.mxu1 }
 0x119   : > { %v901_v18 = vadd.f32 %v1387_v13, %v836_v8  ;;  %v989_v19 = vmax.f32 %v961_v14, 0.0 }
 0x11a   : > { %v1389_v22 = vpop.f32.mrf.mxu0  ;;  %v1429_v52 = vpop.f32.mrf.mxu1 }
 0x11b   : > { %v996_v25 = vpack.c.bf16 %v989_v19, %v988_v17  ;;  %v1390_v26 = vadd.f32 %v1389_v22, %v1388_v15  ;;  %v966_v39 = vadd.f32 %v1424_v57, %v901_v18 }
 0x11c   : > { %v1391_v28 = vpop.f32.mrf.mxu0  ;;  %v976_v37 = vpop.f32.mrf.mxu1 }
 0x11d   : > { %v904_v45 = vadd.f32 %v1390_v26, %v839_v23  ;;  %1446 = vmatprep.mubr.bf16.mxu0 %v996_v25  ;;  %v990_v32 = vmax.f32 %v966_v39, 0.0 }
 0x11e   : > { %v1392_v46 = vpop.f32.mrf.mxu0 }
 0x11f   : > { %v969_v51 = vadd.f32 %v1425_v3, %v904_v45  ;;  %v1393_v31 = vadd.f32 %v1392_v46, %v1391_v28 }
 0x120   : > { %v1394_v33 = vpop.f32.mrf.mxu0 }
 0x121   : > { %v991_v34 = vmax.f32 %v969_v51, 0.0  ;;  %v909_v53 = vadd.f32 %v1393_v31, %v844_v27 }
 0x122   : > { %v1395_v56 = vpop.f32.mrf.mxu0 }
 0x123   : > { %v997_v57 = vpack.c.bf16 %v991_v34, %v990_v32  ;;  %v1396_v58 = vadd.f32 %v1395_v56, %v1394_v33  ;;  %v974_v59 = vadd.f32 %v973_v30, %v909_v53 }
 0x124   : > { %v1397_v35 = vpop.f32.mrf.mxu0 }
 0x125   : > { %1447 = vmatmul.mubr.bf16.vlgmr.msra.gmra.mxu0 %v997_v57  ;;  %v912_v60 = vadd.f32 %v1396_v58, %v847_v36  ;;  %v992_v2 = vmax.f32 %v974_v59, 0.0 }
 0x126   : > { %v1398_v62 = vpop.f32.mrf.mxu0 }
 0x127   : > { %v1399_v40 = vadd.f32 %v1398_v62, %v1397_v35  ;;  %v977_v43 = vadd.f32 %v976_v37, %v912_v60 }
 0x128   : > { %v1400_v1 = vpop.f32.mrf.mxu0 }
 0x129   : > { %v917_v42 = vadd.f32 %v1399_v40, %v852_v61  ;;  %v993_v44 = vmax.f32 %v977_v43, 0.0 }
 0x12a   : > { %v1401_v3 = vpop.f32.mrf.mxu0 }
 0x12b   : > { %v998_v5 = vpack.c.bf16 %v993_v44, %v992_v2  ;;  %v1402_v6 = vadd.f32 %v1401_v3, %v1400_v1  ;;  %v982_v7 = vadd.f32 %v1428_v16, %v917_v42 }
 0x12d   : > { %v920_v8 = vadd.f32 %v1402_v6, %v855_v4  ;;  %1450 = vmatprep.mubr.bf16.mxu1 %v998_v5  ;;  %v994_v10 = vmax.f32 %v982_v7, 0.0 }
 0x12f   : > { %v985_v9 = vadd.f32 %v1429_v52, %v920_v8 }
 0x131   : > { %v995_v41 = vmax.f32 %v985_v9, 0.0 }
 0x133   : > { %v999_v11 = vpack.c.bf16 %v995_v41, %v994_v10 }
 0x135   : > { %1451 = vmatmul.mubr.bf16.vlgmr.msra.gmra.mxu1 %v999_v11 }
 0x1e5   : > { %v1448_v50 = vpop.f32.mrf.mxu0 }
 0x1e6   : > { %v1138_v12 = vadd.f32 %v1448_v50, %v1280_v48 }
 0x1e7   : > { %v1098_v13 = vpop.f32.mrf.mxu0 }
 0x1e8   : > { %1147 = vst.msk [vmem:[%s229_s7 + $0x10] sm:$0xff] %vm1144_vm1, %v1138_v12  ;;  %v1136_v14 = vadd.f32 %v1280_v48, %v1098_v13 }
 0x1e9   : > { %v1449_v15 = vpop.f32.mrf.mxu0 }
 0x1ea   : > { %1145 = vst.msk [vmem:[%s229_s7] sm:$0xff] %vm1144_vm1, %v1136_v14  ;;  %v1139_v16 = vadd.f32 %v1449_v15, %v1280_v48 }
 0x1eb   : > { %v1101_v17 = vpop.f32.mrf.mxu0 }
 0x1ec   : > { %1148 = vst.msk [vmem:[%s229_s7 + $0x18] sm:$0xff] %vm1144_vm1, %v1139_v16  ;;  %v1137_v18 = vadd.f32 %v1280_v48, %v1101_v17 }
 0x1ee   : > { %1146 = vst.msk [vmem:[%s229_s7 + $0x8] sm:$0xff] %vm1144_vm1, %v1137_v18 }
 0x1f5   : > { %v1452_v19 = vpop.f32.mrf.mxu1 }
 0x1f6   : > { %v1142_v20 = vadd.f32 %v1452_v19, %v1280_v48 }
 0x1f7   : > { %v1114_v21 = vpop.f32.mrf.mxu1 }
 0x1f8   : > { %1151 = vst.msk [vmem:[%s229_s7 + $0x30] sm:$0xff] %vm1144_vm1, %v1142_v20  ;;  %v1140_v22 = vadd.f32 %v1280_v48, %v1114_v21 }
 0x1f9   : > { %v1453_v23 = vpop.f32.mrf.mxu1 }
 0x1fa   : > { %1149 = vst.msk [vmem:[%s229_s7 + $0x20] sm:$0xff] %vm1144_vm1, %v1140_v22  ;;  %v1143_v24 = vadd.f32 %v1453_v23, %v1280_v48 }
 0x1fb   : > { %v1117_v25 = vpop.f32.mrf.mxu1 }
 0x1fc   : > { %1152 = vst.msk [vmem:[%s229_s7 + $0x38] sm:$0xff] %vm1144_vm1, %v1143_v24  ;;  %v1141_v26 = vadd.f32 %v1280_v48, %v1117_v25 }
 0x1fe   : > { %1150 = vst.msk [vmem:[%s229_s7 + $0x28] sm:$0xff] %vm1144_vm1, %v1141_v26 }
 0x1ff PF: > { %s15_s18 = sadd.s32 1, %s1542_s18  }
 0x200   : > { %p12_p4 = scmp.ge.s32.totalorder %s15_s18, 6  }
 0x202   :  { %14 = sbr.rel (!%p12_p4) target bundleno = 1 (0x1), region = 70 }

</bundles_post_ra>
